<compile_context>
chip_gen: v6e
topology: v6e:2x2x1
jax: 0.10.0
libtpu: 0.0.40
codegen_flags: <defaults>
</compile_context>

<pallas_src>
import jax
import jax.numpy as jnp
from jax.experimental import pallas as pl
from jax.experimental.pallas import tpu as pltpu


N_MATERIALS = 16
N_FEATURES = 8                 # n_features
N_HIDDEN = 2 * N_FEATURES      # 16
N_DOMAINS = 2
LEAKY_SLOPE = 0.01             # PyTorch nn.LeakyReLU default
BN_EPS = 1e-5
HEIGHT = 32                    # fixed by ReshapeChannels(32, 32)
WIDTH = 32
PIX = HEIGHT * WIDTH           # 1024 -> lane-dense (multiple of 128)

# Packed parameter slab layout (rows of the (26, 16) weight slab / (26, 1) shift vec):
#   [ 0: 8)  W1 (8, 16)  with BN1 scale folded   | sh1 = BN1 shift
#   [ 8:24)  W2 (16, 8)  with BN2 scale folded   | sh2 = BN2 shift   (cols 8:16 zero)
#   [24:26)  W3 (2, 16)                          | b3  = Linear bias
N_WROWS = N_FEATURES + N_HIDDEN + N_DOMAINS     # 26
_W1_LO, _W1_HI = 0, N_FEATURES
_W2_LO, _W2_HI = N_FEATURES, N_FEATURES + N_HIDDEN
_W3_LO, _W3_HI = N_FEATURES + N_HIDDEN, N_WROWS


def _mlp_kernel(x_ref, w_ref, s_ref, o_ref):
    # x_ref: (TB, 16, 1024)  -- TB images, channels on sublanes, pixels on lanes
    # w_ref: (26, 16) packed weight slab, s_ref: (26, 1) packed shifts/bias
    # o_ref: (TB, 2, 1024)
    w = w_ref[...]
    s = s_ref[...]
    w1 = w[_W1_LO:_W1_HI, :]                 # (8, 16)   BN1 scale folded in
    w2 = w[_W2_LO:_W2_HI, :N_FEATURES]       # (16, 8)   BN2 scale folded in
    w3 = w[_W3_LO:_W3_HI, :N_HIDDEN]         # (2, 16)
    sh1 = s[_W1_LO:_W1_HI]                   # (8, 1)
    sh2 = s[_W2_LO:_W2_HI]                   # (16, 1)
    b3 = s[_W3_LO:_W3_HI]                    # (2, 1)

    tb = x_ref.shape[0]
    for i in range(tb):                      # static unroll over the TB images
        x = x_ref[i]                         # (16, 1024)

        # Linear(16->8, no bias) [BN1 scale folded] + BN1 shift + LeakyReLU
        h1 = jnp.dot(w1, x, preferred_element_type=jnp.float32) + sh1
        h1 = jnp.maximum(h1, LEAKY_SLOPE * h1)

        # Linear(8->16, no bias) [BN2 scale folded] + BN2 shift + LeakyReLU
        h2 = jnp.dot(w2, h1, preferred_element_type=jnp.float32) + sh2
        h2 = jnp.maximum(h2, LEAKY_SLOPE * h2)

        # Linear(16->2, with bias)
        out = jnp.dot(w3, h2, preferred_element_type=jnp.float32) + b3
        o_ref[i] = out.astype(o_ref.dtype)


def fc_domain_discriminator(x_nchw, folded_params, tb=8):
    """Forward of FCDomainDiscriminator (inference mode).

    x_nchw: (B, n_materials, 32, 32) float32
    folded_params: (wslab, sslab) from fold_params()
    tb: images per grid step (8 is a good default for v5e/v6e; use 16 on v7x).
    returns: (B, n_domains, 32, 32) float32
    """
    wslab, sslab = folded_params
    B, C, H, W = x_nchw.shape
    assert C == N_MATERIALS and H == HEIGHT and W == WIDTH  # ReshapeChannels(32, 32)

    # Free reshape (no transpose): the 1024 pixels become the lane axis.
    x3d = x_nchw.reshape(B, C, PIX)

    # Clamp TB: never exceed B, and keep >= 2 grid steps so both v7x TensorCores
    # (and megacore) get work.  VMEM is never a constraint here (~TB*72 KiB/step).
    tb = max(1, min(tb, B))
    if B >= 2:
        tb = min(tb, pl.cdiv(B, 2))
    grid_b = pl.cdiv(B, tb)

    full2 = lambda b: (0, 0)  # tiny params: whole slab every grid step

    cost = pl.CostEstimate(
        flops=2 * B * PIX * (N_MATERIALS * N_FEATURES
                             + N_FEATURES * N_HIDDEN
                             + N_HIDDEN * N_DOMAINS),
        transcendentals=0,
        bytes_accessed=4 * (B * PIX * (N_MATERIALS + N_DOMAINS)
                            + wslab.size + sslab.size),
    )

    out3d = pl.pallas_call(
        _mlp_kernel,
        out_shape=jax.ShapeDtypeStruct((B, N_DOMAINS, PIX), jnp.float32),
        grid_spec=pltpu.PrefetchScalarGridSpec(
            num_scalar_prefetch=0,
            grid=(grid_b,),
            in_specs=[
                pl.BlockSpec((tb, N_MATERIALS, PIX), lambda b: (b, 0, 0)),  # images
                pl.BlockSpec((N_WROWS, N_MATERIALS), full2),                # weight slab
                pl.BlockSpec((N_WROWS, 1), full2),                          # shifts/bias
            ],
            out_specs=pl.BlockSpec((tb, N_DOMAINS, PIX), lambda b: (b, 0, 0)),
        ),
        compiler_params=pltpu.CompilerParams(
            dimension_semantics=("parallel",)),
        cost_estimate=cost,
    )(x3d, wslab, sslab)

    # ReshapeChannels(32, 32): free reshape back to NCHW.
    return out3d.reshape(B, N_DOMAINS, HEIGHT, WIDTH)


def make_raw_params(key):
    """Deterministic synthetic parameters, shapes following the PyTorch __init__
    (un-folded: Linear weights + BatchNorm1d gamma/beta/running_mean/running_var)."""
    ks = jax.random.split(key, 5)
    # PyTorch Linear(in, out) stores weight as (out, in).
    w1 = jax.random.normal(ks[0], (N_FEATURES, N_MATERIALS), jnp.float32) * 0.2
    w2 = jax.random.normal(ks[1], (N_HIDDEN, N_FEATURES), jnp.float32) * 0.2
    w3 = jax.random.normal(ks[2], (N_DOMAINS, N_HIDDEN), jnp.float32) * 0.2
    b3 = jax.random.normal(ks[3], (N_DOMAINS,), jnp.float32) * 0.1

    def bn(kg, kb, km, kv, n):
        gamma = 1.0 + 0.1 * jax.random.normal(kg, (n,), jnp.float32)
        beta = 0.1 * jax.random.normal(kb, (n,), jnp.float32)
        mean = 0.1 * jax.random.normal(km, (n,), jnp.float32)
        var = 1.0 + 0.1 * jax.random.uniform(kv, (n,), jnp.float32)
        return gamma, beta, mean, var

    k_bn = jax.random.split(ks[4], 8)
    bn1 = bn(k_bn[0], k_bn[1], k_bn[2], k_bn[3], N_FEATURES)
    bn2 = bn(k_bn[4], k_bn[5], k_bn[6], k_bn[7], N_HIDDEN)
    return w1, bn1, w2, bn2, w3, b3


def fold_params(raw):
    """Fold eval-mode BatchNorm scales into the preceding bias-free Linear weights
    and pack everything into one weight slab + one shift vector (2 kernel operands)."""
    w1, (g1, be1, m1, v1), w2, (g2, be2, m2, v2), w3, b3 = raw
    s1 = g1 / jnp.sqrt(v1 + BN_EPS)
    sh1 = be1 - m1 * s1
    s2 = g2 / jnp.sqrt(v2 + BN_EPS)
    sh2 = be2 - m2 * s2

    wslab = jnp.zeros((N_WROWS, N_MATERIALS), jnp.float32)
    wslab = wslab.at[_W1_LO:_W1_HI, :].set(w1 * s1[:, None])
    wslab = wslab.at[_W2_LO:_W2_HI, :N_FEATURES].set(w2 * s2[:, None])
    wslab = wslab.at[_W3_LO:_W3_HI, :N_HIDDEN].set(w3)
    sslab = jnp.concatenate([sh1, sh2, b3]).reshape(N_WROWS, 1)
    return wslab, sslab


def _reference(x_nchw, raw):
    """Pure-JAX reference following PyTorch's graph with UN-folded Linear+BatchNorm
    (validates both the kernel and the BN folding in fold_params)."""
    w1, (g1, be1, m1, v1), w2, (g2, be2, m2, v2), w3, b3 = raw
    B, C, H, W = x_nchw.shape
    x = jnp.transpose(x_nchw, (0, 2, 3, 1)).reshape(-1, C)   # FlattenChannels
    h = x @ w1.T
    h = (h - m1) / jnp.sqrt(v1 + BN_EPS) * g1 + be1
    h = jnp.where(h > 0, h, LEAKY_SLOPE * h)
    h = h @ w2.T
    h = (h - m2) / jnp.sqrt(v2 + BN_EPS) * g2 + be2
    h = jnp.where(h > 0, h, LEAKY_SLOPE * h)
    o = h @ w3.T + b3
    return jnp.transpose(o.reshape(B, H, W, N_DOMAINS), (0, 3, 1, 2))  # ReshapeChannels


if __name__ == "__main__":
    key = jax.random.PRNGKey(0)
    k_x, k_p = jax.random.split(key)

    # batch=2, n_materials=16, spatial=32x32 (required by ReshapeChannels(32, 32))
    x = jax.random.normal(k_x, (2, N_MATERIALS, HEIGHT, WIDTH), jnp.float32)
    raw = make_raw_params(k_p)
    folded = fold_params(raw)

    out = jax.block_until_ready(fc_domain_discriminator(x, folded))

    ref = _reference(x, raw)
    assert out.shape == (2, N_DOMAINS, HEIGHT, WIDTH)
    assert jnp.allclose(out, ref, atol=1e-4, rtol=1e-4)

    print("KERNEL_OK")
</pallas_src>

<mosaic_0001>
module attributes {stable_mosaic.version = 11 : i64} {
  func.func @_mlp_kernel(%arg0: i32, %arg1: memref<1x16x1024xf32, #tpu.memory_space<vmem>>, %arg2: memref<26x16xf32, #tpu.memory_space<vmem>>, %arg3: memref<26x1xf32, #tpu.memory_space<vmem>>, %arg4: memref<1x2x1024xf32, #tpu.memory_space<vmem>>) attributes {dimension_semantics = [#tpu.dimension_semantics<parallel>], iteration_bounds = array<i64: 2>, scalar_prefetch = 0 : i64, scratch_operands = 0 : i64, tpu.core_type = #tpu.core_type<tc>, window_params = [{transform_indices = @transform_0, window_bounds = array<i64: 1, 16, 1024>}, {pipeline_mode = #tpu.pipeline_mode<synchronous>, transform_indices = @transform_1, window_bounds = array<i64: 26, 16>}, {pipeline_mode = #tpu.pipeline_mode<synchronous>, transform_indices = @transform_2, window_bounds = array<i64: 26, 1>}, {transform_indices = @transform_3, window_bounds = array<i64: 1, 2, 1024>}]} {
    %c0 = arith.constant 0 : index
    %c0_0 = arith.constant 0 : index
    %0 = vector.load %arg2[%c0, %c0_0] : memref<26x16xf32, #tpu.memory_space<vmem>>, vector<26x16xf32>
    %c0_1 = arith.constant 0 : index
    %c0_2 = arith.constant 0 : index
    %1 = vector.load %arg3[%c0_1, %c0_2] : memref<26x1xf32, #tpu.memory_space<vmem>>, vector<26x1xf32>
    %2 = vector.extract_strided_slice %0 {offsets = [0, 0], sizes = [8, 16], strides = [1, 1]} : vector<26x16xf32> to vector<8x16xf32>
    %3 = vector.extract_strided_slice %0 {offsets = [8, 0], sizes = [16, 8], strides = [1, 1]} : vector<26x16xf32> to vector<16x8xf32>
    %4 = vector.extract_strided_slice %0 {offsets = [24, 0], sizes = [2, 16], strides = [1, 1]} : vector<26x16xf32> to vector<2x16xf32>
    %5 = vector.extract_strided_slice %1 {offsets = [0, 0], sizes = [8, 1], strides = [1, 1]} : vector<26x1xf32> to vector<8x1xf32>
    %6 = vector.extract_strided_slice %1 {offsets = [8, 0], sizes = [16, 1], strides = [1, 1]} : vector<26x1xf32> to vector<16x1xf32>
    %7 = vector.extract_strided_slice %1 {offsets = [24, 0], sizes = [2, 1], strides = [1, 1]} : vector<26x1xf32> to vector<2x1xf32>
    %c0_3 = arith.constant 0 : index
    %c0_4 = arith.constant 0 : index
    %c0_5 = arith.constant 0 : index
    %8 = vector.load %arg1[%c0_3, %c0_4, %c0_5] : memref<1x16x1024xf32, #tpu.memory_space<vmem>>, vector<1x16x1024xf32>
    %9 = vector.shape_cast %8 : vector<1x16x1024xf32> to vector<16x1024xf32>
    %cst = arith.constant dense<0.000000e+00> : vector<8x1024xf32>
    %10 = tpu.matmul %2, %9, %cst {dimension_numbers = #tpu.dot_dimension_numbers<[1], [0], [0], [1], [0, 0, 1, 1], [], []>} : vector<8x16xf32>, vector<16x1024xf32>, vector<8x1024xf32> -> vector<8x1024xf32>
    %11 = vector.broadcast %5 : vector<8x1xf32> to vector<8x1024xf32>
    %12 = arith.addf %10, %11 : vector<8x1024xf32>
    %cst_6 = arith.constant 0.00999999977 : f32
    %13 = vector.broadcast %cst_6 : f32 to vector<8x1024xf32>
    %14 = arith.mulf %13, %12 : vector<8x1024xf32>
    %15 = arith.maximumf %12, %14 : vector<8x1024xf32>
    %cst_7 = arith.constant dense<0.000000e+00> : vector<16x1024xf32>
    %16 = tpu.matmul %3, %15, %cst_7 {dimension_numbers = #tpu.dot_dimension_numbers<[1], [0], [0], [1], [0, 0, 1, 1], [], []>} : vector<16x8xf32>, vector<8x1024xf32>, vector<16x1024xf32> -> vector<16x1024xf32>
    %17 = vector.broadcast %6 : vector<16x1xf32> to vector<16x1024xf32>
    %18 = arith.addf %16, %17 : vector<16x1024xf32>
    %cst_8 = arith.constant 0.00999999977 : f32
    %19 = vector.broadcast %cst_8 : f32 to vector<16x1024xf32>
    %20 = arith.mulf %19, %18 : vector<16x1024xf32>
    %21 = arith.maximumf %18, %20 : vector<16x1024xf32>
    %cst_9 = arith.constant dense<0.000000e+00> : vector<2x1024xf32>
    %22 = tpu.matmul %4, %21, %cst_9 {dimension_numbers = #tpu.dot_dimension_numbers<[1], [0], [0], [1], [0, 0, 1, 1], [], []>} : vector<2x16xf32>, vector<16x1024xf32>, vector<2x1024xf32> -> vector<2x1024xf32>
    %23 = vector.broadcast %7 : vector<2x1xf32> to vector<2x1024xf32>
    %24 = arith.addf %22, %23 : vector<2x1024xf32>
    %c0_10 = arith.constant 0 : index
    %c0_11 = arith.constant 0 : index
    %c0_12 = arith.constant 0 : index
    %25 = vector.load %arg4[%c0_10, %c0_11, %c0_12] : memref<1x2x1024xf32, #tpu.memory_space<vmem>>, vector<1x2x1024xf32>
    %26 = vector.shape_cast %25 : vector<1x2x1024xf32> to vector<2x1024xf32>
    %27 = vector.shape_cast %24 : vector<2x1024xf32> to vector<1x2x1024xf32>
    tpu.vector_store %arg4[%c0_10, %c0_11, %c0_12], %27 {strides = array<i32>} : memref<1x2x1024xf32, #tpu.memory_space<vmem>>, vector<1x2x1024xf32>,
    return
  }
  func.func @transform_0(%arg0: i32) -> (i32, i32, i32) {
    %c0_i32 = arith.constant 0 : i32
    %c0_i32_0 = arith.constant 0 : i32
    %c0_i32_1 = arith.constant 0 : i32
    return %arg0, %c0_i32, %c0_i32_0 : i32, i32, i32
  }
  func.func @transform_1(%arg0: i32) -> (i32, i32) {
    %c0_i32 = arith.constant 0 : i32
    %c0_i32_0 = arith.constant 0 : i32
    %c0_i32_1 = arith.constant 0 : i32
    return %c0_i32, %c0_i32_0 : i32, i32
  }
  func.func @transform_2(%arg0: i32) -> (i32, i32) {
    %c0_i32 = arith.constant 0 : i32
    %c0_i32_0 = arith.constant 0 : i32
    %c0_i32_1 = arith.constant 0 : i32
    return %c0_i32, %c0_i32_0 : i32, i32
  }
  func.func @transform_3(%arg0: i32) -> (i32, i32, i32) {
    %c0_i32 = arith.constant 0 : i32
    %c0_i32_0 = arith.constant 0 : i32
    %c0_i32_1 = arith.constant 0 : i32
    return %arg0, %c0_i32, %c0_i32_0 : i32, i32, i32
  }
}

</mosaic_0001>

<bundles_post_ra>
// kernel: tpu_custom_call.1
= control target key start
LH: loop header
LB: loop body
LE: loop exit
PB: predicated region body
PF: predicated region fallthrough
CT: control target
= control target key end

     0   :  { %8 = vsyncpa [#allocation3], 0  ;;  %s1723_s0 = inlined_call_operand.hbm [shape: f32[2,16,1024], index: 0, kind: input, shape index: {}]   ;;  %s1724_s1 = inlined_call_operand.vmem [shape: f32[26,16], index: 1, kind: input, shape index: {}]   ;;  %s1725_s2 = inlined_call_operand.vmem [shape: f32[26,1], index: 2, kind: input, shape index: {}]   ;;  %s1726_s3 = inlined_call_operand.hbm [shape: f32[2,2,1024], index: 3, kind: output, shape index: {}]  }
   0x1   :  { %10 = vsyncpa [#allocation3 + $0x1], 0 }
   0x2   :  { %11 = vsyncpa [#allocation4], 0 }
   0x3   :  { %13 = vsyncpa [#allocation4 + $0x1], 0  ;;  %s1508_s12 = smov 0   ;;  %s1510_s13 = smov 0  }
   0x4   :  { %s1512_s14 = smov 0   ;;  %s1514_s15 = smov 0  }
   0x5 LB: > { %s1529_s16 = sadd.s32 4294967295, %s1479_s15   ;;  %s1302_s17 = sadd.s32 4294967294, %s1479_s15   ;;  %s1479_s15 = sphi %s1514_s15, %s1741_s15   ;;  %s1475_s14 = sphi %s1512_s14, %s1740_s14   ;;  %s1471_s13 = sphi %s1510_s13, %s1739_s13   ;;  %s1467_s12 = sphi %s1508_s12, %s1738_s12  }
   0x6   : > { %s1533_s18 = sadd.s32 1, %s1479_s15   ;;  %s26_s19 = sadd.s32 1, %s1475_s14 }
   0x7   : > { %s23_s20 = ssub.s32 %s1479_s15, %s1533_s18  ;;  %p33_p0 = scmp.ne.s32.totalorder %s1475_s14, %s1471_s13 }
   0x8   : > { %p24_p1 = scmp.eq.s32.totalorder %s23_s20, 0  ;;  %p34_p2 = scmp.eq.s32.totalorder %s1479_s15, 0 }
   0x9   : > { %p39_p3 = scmp.ne.s32.totalorder %s1471_s13, %s1467_s12  ;;  %p40_p4 = scmp.eq.s32.totalorder %s1529_s16, 0 }
   0xa   : > { %s1545_s21 = scalar_select %p24_p1, %s1475_s14, %s26_s19  }
   0xb   : > { %p1547_p5 = por %p34_p2, %p33_p0  ;;  %p1551_p6 = por %p40_p4, %p39_p3 }
   0xc   : > { %p105_p7 = scmp.eq.s32.totalorder %s1529_s16, 1  ;;  %p111_p8 = scmp.eq.s32.totalorder %s1302_s17, 1 }
   0xd   : > { %s1730_s23 = scalar_select %p1551_p6, 1, 0 }
   0xe   : > { %p1346_p10 = scmp.lt.s32.totalorder %s1479_s15, 2  ;;  %p1558_p11 = por %p105_p7, %p33_p0 }
   0xf   : > { %p1562_p12 = por %p111_p8, %p39_p3  ;;  %s137_s26 = sand.u32 1, %s1475_s14  }
  0x10   : > { %s1731_s24 = scalar_select %p1558_p11, 1, 0 }
  0x11   : > { %s1732_s25 = scalar_select %p1562_p12, 1, 0 }
  0x12   : > { %s1332_s27 = sshll.u32 %s1479_s15, 11  ;;  %s1305_s28 = sshll.u32 %s137_s26, 7 }
  0x13   : > { %s1571_s4 = scalar_lea.hbm %s1723_s0, %s1332_s27  ;;  %s141_s5 = scalar_lea.vmem [#allocation2], %s1305_s28 }
  0x14   : > { %s148_s6 = sshll.u32 %s141_s5, 4  ;;  %p1575_p13 = pnand %p1346_p10, %p1547_p5  ;;  %s1579_s6 = int_to_ptr.vmem [resolvable:$true] %s148_s6 }
  0x15   : > { %s1581_s8 = scalar_lea.sflag [#allocation3], %s137_s26  ;;  %s1387_s9 = scalar_lea.hbm %s1571_s4, 2048 }
  0x16   : > { %p1388_p0 = scmp.ne.s32.totalorder %s1571_s4, %s1387_s9  ;;  %p1389_p1 = pneg %p1575_p13 }
  0x17   : > { %s1392_s17 = scalar_lea.hbm %s1723_s0, 4096  ;;  %p1393_p4 = scmp.lt.s32.totalorder %s1571_s4, %s1723_s0 }
  0x18   : > { %p1390_p2 = pnand %p1389_p1, %p1388_p0  ;;  %p1394_p5 = scmp.lt.s32.totalorder %s1392_s17, %s1387_s9 }
  0x1a   : > { %p1391_p3 = pneg %p1390_p2  ;;  %p1395_p7 = por %p1394_p5, %p1393_p4 }
  0x1c   : > { %p1396_p8 = pnand %p1395_p7, %p1391_p3 }
  0x1e   : > { %1399 = shalt.err (!%p1396_p8)
}
  0x1f   : > { %s1400_s22 = scalar_lea.vmem %s1579_s6, 2048  ;;  %s1481_s26 = smov [#allocation2]  }
  0x20   : > { %p1401_p10 = scmp.ne.s32.totalorder %s1579_s6, %s1400_s22  ;;  %s1405_s27 = sshll.u32 %s1481_s26, 4  ;;  %s1406_s27 = int_to_ptr.vmem [resolvable:$false] %s1405_s27 }
  0x21   : > { %s1407_s28 = scalar_lea.vmem %s1406_s27, 4096  ;;  %p1408_p2 = scmp.lt.s32.totalorder %s1579_s6, %s1406_s27 }
  0x22   : > { %p1403_p9 = pnand %p1401_p10, %p1389_p1  ;;  %p1409_p12 = scmp.lt.s32.totalorder %s1407_s28, %s1400_s22 }
  0x24   : > { %p1404_p0 = pneg %p1403_p9  ;;  %p1410_p11 = por %p1409_p12, %p1408_p2 }
  0x26   : > { %p1411_p6 = pnand %p1410_p11, %p1404_p0 }
  0x28   : > { %1414 = shalt.err (!%p1411_p6)
}
  0x29   : > { %s1482_s29 = smov 1024   ;;  %s1483_s30 = smov 64  }
  0x2a   : > { %1341 = dma.hbm_to_vmem [thread:$0]  (!%p1575_p13), %s1571_s4, 2048, %s1579_s6, %s1581_s8, %s1482_s29, %s1482_s29, %s1483_s30  }
  0x2b   : > { %p1308_p9 = scmp.ge.s32.totalorder %s1479_s15, 1  ;;  %p156_p1 = scmp.lt.s32.totalorder %s1479_s15, 3 }
  0x2d   : > { %p157_p3 = pnand %p1308_p9, %p156_p1 }
  0x2e   : > { %s1605_s5 = sand.u32 (!%p157_p3), 1, %s1471_s13   ;;  %p1734_p6 = scmp.ne.s32.totalorder (!%p157_p3), %s1730_s23, 0 }
  0x2f   : > { %160 = sbr.rel (%p157_p3) target bundleno = 698 (0x2ba), region = 32  ;;  %s1309_s9 = sshll.u32 (!%p157_p3), %s1605_s5, 7 }
  0x30   : > { %s163_s10 = scalar_lea.sflag (!%p157_p3), [#allocation3], %s1605_s5  ;;  %s1609_s11 = scalar_lea.vmem (!%p157_p3), [#allocation2], %s1309_s9 }
  0x34   : > { %1458 = dma.done.wait (%p1734_p6), %s163_s10, 2048  }
  0x35   : > { %1460 = vsyncadd (%p1734_p6), %s163_s10, 4294965248  ;;  %v1484_v0 = vmov 0.0   ;;  %v1485_v1 = vmov 0   ;;  %v206_v2 = vld [vmem:[%s1609_s11 + $0x48] sm:$0xff]  ;;  %v208_v3 = vld [vmem:[%s1609_s11 + $0x58] sm:$0xff]  ;;  %vm218_vm0 = vcmask 130048  }
  0x36   : > { %286 = vmatprep.mubr.f32.mxu0 %v1484_v0  ;;  %357 = vmatprep.mubr.f32.mxu1 %v1484_v0  ;;  %v205_v4 = vld [vmem:[%s1609_s11 + $0x40] sm:$0xff]  ;;  %v207_v5 = vld [vmem:[%s1609_s11 + $0x50] sm:$0xff]  ;;  %v198_v6 = vld [vmem:[%s1609_s11 + $0x8] sm:$0xff]  ;;  %vm532_vm1 = vcmask 64512   ;;  %s1333_s4 = sshll.u32 %s1529_s16, 8  ;;  %s1218_s19 = scalar_lea.sflag [#allocation4], %s1605_s5 }
  0x37   : > { %1385 = vset.pattern.permute.xlu0 %v1485_v1  ;;  %1386 = vset.pattern.permute.xlu1 %v1485_v1  ;;  %v200_v7 = vld [vmem:[%s1609_s11 + $0x18] sm:$0xff]  ;;  %v197_v8 = vld [vmem:[%s1609_s11] sm:$0xff]  ;;  %v199_v9 = vld [vmem:[%s1609_s11 + $0x10] sm:$0xff]  ;;  %s1230_s17 = scalar_lea.hbm %s1726_s3, %s1333_s4  ;;  %p1735_p12 = scmp.ne.s32.totalorder %s1731_s24, 0 }
  0x38   : > { %250 = vmatprep.subr.mxu0 %v206_v2  ;;  %321 = vmatprep.subr.mxu1 %v208_v3  ;;  %v189_v10 = vld [vmem:[%s1724_s1] sm:$0xff]  ;;  %v210_v11 = vld [vmem:[%s1609_s11 + $0x68] sm:$0xff]  ;;  %v212_v12 = vld [vmem:[%s1609_s11 + $0x78] sm:$0xff]  ;;  %s1487_s22 = smov [#allocation5]  }
  0x39   : > { %251 = vmatpush1.msra.mxu0 %v205_v4  ;;  %322 = vmatpush1.msra.mxu1 %v207_v5  ;;  %v209_v13 = vld [vmem:[%s1609_s11 + $0x60] sm:$0xff]  ;;  %v211_v14 = vld [vmem:[%s1609_s11 + $0x70] sm:$0xff]  ;;  %v202_v15 = vld [vmem:[%s1609_s11 + $0x28] sm:$0xff]  ;;  %s1419_s26 = sshll.u32 %s1487_s22, 4  ;;  %s1420_s26 = int_to_ptr.vmem [resolvable:$false] %s1419_s26 }
  0x3a   : > { %252 = vmatprep.subr.mxu0 %v198_v6  ;;  %323 = vmatprep.subr.mxu1 %v200_v7  ;;  %v204_v16 = vld [vmem:[%s1609_s11 + $0x38] sm:$0xff]  ;;  %v201_v17 = vld [vmem:[%s1609_s11 + $0x20] sm:$0xff]  ;;  %v203_v18 = vld [vmem:[%s1609_s11 + $0x30] sm:$0xff]  ;;  %s1310_s11 = sshll.u32 %s1605_s5, 4  ;;  %s1421_s16 = scalar_lea.vmem %s1420_s26, 512 }
  0x3b   : > { %253 = vmatpush1.msra.mxu0 %v197_v8  ;;  %324 = vmatpush1.msra.mxu1 %v199_v9  ;;  %v193_v19 = vld [vmem:[%s1725_s2] sm:$0xff]  ;;  %v195_v20 = vld [vmem:[%s1725_s2 + $0x10] sm:$0xff]  ;;  %v194_v21 = vld [vmem:[%s1725_s2 + $0x8] sm:$0xff]  ;;  %s188_s23 = scalar_lea.vmem [#allocation5], %s1310_s11 }
  0x3c   : > { %1311 = vmatmul.mubr.msk.f32.vlgmr.msra.gmra.mxu0 %vm218_vm0, %v189_v10  ;;  %1312 = vmatmul.mubr.msk.f32.vlgmr.msra.gmra.mxu1 %vm218_vm0, %v189_v10  ;;  %v196_v22 = vld [vmem:[%s1725_s2 + $0x18] sm:$0x3]  ;;  %v190_v46 = vld [vmem:[%s1724_s1 + $0x8] sm:$0xff]  ;;  %v191_v57 = vld [vmem:[%s1724_s1 + $0x10] sm:$0xff]  ;;  %s1232_s6 = sshll.u32 %s188_s23, 4  ;;  %s1233_s6 = int_to_ptr.vmem [resolvable:$true] %s1232_s6 }
  0x3d   : > { %392 = vmatprep.subr.mxu0 %v210_v11  ;;  %463 = vmatprep.subr.mxu1 %v212_v12  ;;  %s1415_s20 = scalar_lea.vmem %s1233_s6, 256  ;;  %p1422_p5 = scmp.lt.s32.totalorder %s1233_s6, %s1420_s26 }
  0x3e   : > { %393 = vmatpush1.msra.mxu0 %v209_v13  ;;  %464 = vmatpush1.msra.mxu1 %v211_v14  ;;  %p1416_p11 = scmp.ne.s32.totalorder %s1233_s6, %s1415_s20  ;;  %p1423_p7 = scmp.lt.s32.totalorder %s1421_s16, %s1415_s20 }
  0x3f   : > { %394 = vmatprep.subr.mxu0 %v202_v15  ;;  %465 = vmatprep.subr.mxu1 %v204_v16 }
  0x40   : > { %395 = vmatpush1.msra.mxu0 %v201_v17  ;;  %428 = vmatprep.mubr.f32.mxu0 %v1484_v0  ;;  %p1417_p13 = pnand %p1416_p11, %p1735_p12  ;;  %p1424_p8 = por %p1423_p7, %p1422_p5 }
  0x41   : > { %466 = vmatpush1.msra.mxu1 %v203_v18  ;;  %499 = vmatprep.mubr.f32.mxu1 %v1484_v0 }
  0x42   : > { %1313 = vmatmul.mubr.msk.f32.vlgmr.msra.gmra.mxu0 %vm218_vm0, %v189_v10  ;;  %1314 = vmatmul.mubr.msk.f32.vlgmr.msra.gmra.mxu1 %vm218_vm0, %v189_v10  ;;  %p1418_p4 = pneg %p1417_p13 }
  0x43   : > { %215 = vperm.xlu0 %1385, %v193_v19   ;;  %603 = vmatprep.mubr.f32.mxu0 %v1484_v0 }
  0x44   : > { %680 = vmatprep.mubr.f32.mxu1 %v1484_v0  ;;  %524 = vperm.xlu1 %1386, %v194_v21   ;;  %p1425_p10 = pnand %p1424_p8, %p1418_p4 }
  0x47   : > { %529 = vperm.xlu0 %1385, %v195_v20  }
  0x48   : > { %881 = vperm.xlu1 %1386, %v196_v22  }
  0xbe   : > { %v216_v23 = vpop.permute.xlu0 %215 }
  0xbf   : > { %v525_v62 = vpop.permute.xlu1 %524 }
  0xc2   : > { %v530_v63 = vpop.permute.xlu0 %529 }
  0xfc   : > { %v288_v24 = vpop.f32.mrf.mxu0  ;;  %v359_v25 = vpop.f32.mrf.mxu1 }
  0xfd   : > { %v289_v26 = vadd.f32 %v288_v24, %v216_v23  ;;  %v360_v27 = vadd.f32 %v359_v25, %v216_v23 }
  0xfe   : > { %v290_v28 = vpop.f32.mrf.mxu0  ;;  %v361_v29 = vpop.f32.mrf.mxu1 }
  0xff   : > { %v291_v30 = vadd.f32 %v290_v28, %v216_v23  ;;  %v362_v31 = vadd.f32 %v361_v29, %v216_v23  ;;  %v506_v32 = vmul.f32 0.01, %v289_v26  ;;  %v508_v33 = vmul.f32 0.01, %v360_v27 }
 0x101   : > { %v507_v34 = vmul.f32 0.01, %v291_v30  ;;  %v509_v35 = vmul.f32 0.01, %v362_v31  ;;  %v514_v42 = vmax.f32 %v289_v26, %v506_v32  ;;  %v516_v43 = vmax.f32 %v360_v27, %v508_v33 }
 0x102   : > { %v430_v36 = vpop.f32.mrf.mxu0  ;;  %v501_v37 = vpop.f32.mrf.mxu1 }
 0x103   : > { %v515_v38 = vmax.f32 %v291_v30, %v507_v34  ;;  %v517_v39 = vmax.f32 %v362_v31, %v509_v35  ;;  %v431_v40 = vadd.f32 %v430_v36, %v216_v23  ;;  %v502_v41 = vadd.f32 %v501_v37, %v216_v23 }
 0x104   : > { %v432_v44 = vpop.f32.mrf.mxu0  ;;  %v503_v45 = vpop.f32.mrf.mxu1 }
 0x105   : > { %v433_v47 = vadd.f32 %v432_v44, %v216_v23  ;;  %v504_v48 = vadd.f32 %v503_v45, %v216_v23  ;;  %569 = vmatprep.subr.mxu0 %v515_v38  ;;  %646 = vmatprep.subr.mxu1 %v517_v39  ;;  %v510_v49 = vmul.f32 0.01, %v431_v40  ;;  %v512_v50 = vmul.f32 0.01, %v502_v41 }
 0x106   : > { %570 = vmatpush1.msra.mxu0 %v514_v42  ;;  %647 = vmatpush1.msra.mxu1 %v516_v43 }
 0x107   : > { %v511_v51 = vmul.f32 0.01, %v433_v47  ;;  %v513_v52 = vmul.f32 0.01, %v504_v48  ;;  %1315 = vmatmul.mubr.msk.f32.vlgmr.msra.gmra.mxu0 %vm532_vm1, %v190_v46  ;;  %1317 = vmatmul.mubr.msk.f32.vlgmr.msra.gmra.mxu1 %vm532_vm1, %v190_v46  ;;  %v518_v55 = vmax.f32 %v431_v40, %v510_v49  ;;  %v520_v56 = vmax.f32 %v502_v41, %v512_v50  ;;  %v192_v41 = vld [vmem:[%s1724_s1 + $0x18] sm:$0x3] }
 0x108   : > { %609 = vmatprep.mubr.f32.mxu0 %v1484_v0  ;;  %686 = vmatprep.mubr.f32.mxu1 %v1484_v0 }
 0x109   : > { %v519_v53 = vmax.f32 %v433_v47, %v511_v51  ;;  %v521_v54 = vmax.f32 %v504_v48, %v513_v52 }
 0x10b   : > { %723 = vmatprep.subr.mxu0 %v519_v53  ;;  %800 = vmatprep.subr.mxu1 %v521_v54 }
 0x10c   : > { %724 = vmatpush1.msra.mxu0 %v518_v55  ;;  %801 = vmatpush1.msra.mxu1 %v520_v56 }
 0x10d   : > { %1316 = vmatmul.mubr.msk.f32.gmra.mxu0 %vm532_vm1, %v191_v57  ;;  %1318 = vmatmul.mubr.msk.f32.gmra.mxu1 %vm532_vm1, %v191_v57 }
 0x10e   : > { %757 = vmatprep.mubr.f32.mxu0 %v1484_v0  ;;  %834 = vmatprep.mubr.f32.mxu1 %v1484_v0 }
 0x111   : > { %1319 = vmatmul.mubr.msk.f32.vlgmr.msra.gmra.mxu0 %vm532_vm1, %v190_v46  ;;  %1321 = vmatmul.mubr.msk.f32.vlgmr.msra.gmra.mxu1 %vm532_vm1, %v190_v46 }
 0x112   : > { %763 = vmatprep.mubr.f32.mxu0 %v1484_v0  ;;  %840 = vmatprep.mubr.f32.mxu1 %v1484_v0 }
 0x115   : > { %1320 = vmatmul.mubr.msk.f32.gmra.mxu0 %vm532_vm1, %v191_v57  ;;  %1322 = vmatmul.mubr.msk.f32.gmra.mxu1 %vm532_vm1, %v191_v57 }
 0x116   : > { %951 = vmatprep.mubr.f32.mxu0 %v1484_v0  ;;  %1022 = vmatprep.mubr.f32.mxu1 %v1484_v0 }
 0x1c7   : > { %v605_v58 = vpop.f32.mrf.mxu0  ;;  %v682_v59 = vpop.f32.mrf.mxu1 }
 0x1c8   : > { %v606_v7 = vadd.f32 %v605_v58, %v525_v62  ;;  %v683_v8 = vadd.f32 %v682_v59, %v525_v62 }
 0x1c9   : > { %v607_v60 = vpop.f32.mrf.mxu0  ;;  %v684_v61 = vpop.f32.mrf.mxu1 }
 0x1ca   : > { %v608_v1 = vadd.f32 %v607_v60, %v525_v62  ;;  %v685_v2 = vadd.f32 %v684_v61, %v525_v62  ;;  %v847_v21 = vmul.f32 0.01, %v606_v7  ;;  %v849_v22 = vmul.f32 0.01, %v683_v8 }
 0x1cc   : > { %v848_v11 = vmul.f32 0.01, %v608_v1  ;;  %v850_v14 = vmul.f32 0.01, %v685_v2  ;;  %v863_v36 = vmax.f32 %v606_v7, %v847_v21  ;;  %v865_v37 = vmax.f32 %v683_v8, %v849_v22 }
 0x1cd   : > { %v611_v3 = vpop.f32.mrf.mxu0  ;;  %v688_v4 = vpop.f32.mrf.mxu1 }
 0x1ce   : > { %v612_v5 = vadd.f32 %v611_v3, %v530_v63  ;;  %v689_v6 = vadd.f32 %v688_v4, %v530_v63  ;;  %v864_v27 = vmax.f32 %v608_v1, %v848_v11  ;;  %v866_v28 = vmax.f32 %v685_v2, %v850_v14 }
 0x1cf   : > { %v613_v9 = vpop.f32.mrf.mxu0  ;;  %v690_v10 = vpop.f32.mrf.mxu1 }
 0x1d0   : > { %v614_v12 = vadd.f32 %v613_v9, %v530_v63  ;;  %v691_v13 = vadd.f32 %v690_v10, %v530_v63  ;;  %v855_v15 = vmul.f32 0.01, %v612_v5  ;;  %v857_v16 = vmul.f32 0.01, %v689_v6 }
 0x1d1   : > { %v759_v17 = vpop.f32.mrf.mxu0  ;;  %v836_v18 = vpop.f32.mrf.mxu1 }
 0x1d2   : > { %v856_v19 = vmul.f32 0.01, %v614_v12  ;;  %v858_v20 = vmul.f32 0.01, %v691_v13  ;;  %v871_v29 = vmax.f32 %v612_v5, %v855_v15  ;;  %v873_v30 = vmax.f32 %v689_v6, %v857_v16  ;;  %v882_v5 = vpop.permute.xlu1 %881 }
 0x1d3   : > { %v761_v23 = vpop.f32.mrf.mxu0  ;;  %v838_v24 = vpop.f32.mrf.mxu1  ;;  %v760_v42 = vadd.f32 %v759_v17, %v525_v62  ;;  %v837_v43 = vadd.f32 %v836_v18, %v525_v62 }
 0x1d4   : > { %v872_v25 = vmax.f32 %v614_v12, %v856_v19  ;;  %v874_v26 = vmax.f32 %v691_v13, %v858_v20  ;;  %v762_v33 = vadd.f32 %v761_v23, %v525_v62  ;;  %v839_v38 = vadd.f32 %v838_v24, %v525_v62 }
 0x1d5   : > { %v765_v31 = vpop.f32.mrf.mxu0  ;;  %v842_v32 = vpop.f32.mrf.mxu1  ;;  %v851_v52 = vmul.f32 0.01, %v760_v42  ;;  %v853_v53 = vmul.f32 0.01, %v837_v43 }
 0x1d6   : > { %v766_v34 = vadd.f32 %v765_v31, %v530_v63  ;;  %v843_v35 = vadd.f32 %v842_v32, %v530_v63  ;;  %915 = vmatprep.subr.mxu0 %v872_v25  ;;  %986 = vmatprep.subr.mxu1 %v874_v26  ;;  %v852_v46 = vmul.f32 0.01, %v762_v33  ;;  %v854_v49 = vmul.f32 0.01, %v839_v38 }
 0x1d7   : > { %v767_v39 = vpop.f32.mrf.mxu0  ;;  %v844_v40 = vpop.f32.mrf.mxu1  ;;  %916 = vmatpush1.msra.mxu0 %v871_v29  ;;  %987 = vmatpush1.msra.mxu1 %v873_v30  ;;  %v867_v60 = vmax.f32 %v760_v42, %v851_v52  ;;  %v869_v61 = vmax.f32 %v837_v43, %v853_v53 }
 0x1d8   : > { %917 = vmatprep.subr.mxu0 %v864_v27  ;;  %988 = vmatprep.subr.mxu1 %v866_v28  ;;  %v768_v44 = vadd.f32 %v767_v39, %v530_v63  ;;  %v845_v45 = vadd.f32 %v844_v40, %v530_v63  ;;  %v859_v47 = vmul.f32 0.01, %v766_v34  ;;  %v861_v48 = vmul.f32 0.01, %v843_v35 }
 0x1d9   : > { %918 = vmatpush1.msra.mxu0 %v863_v36  ;;  %989 = vmatpush1.msra.mxu1 %v865_v37  ;;  %v868_v58 = vmax.f32 %v762_v33, %v852_v46  ;;  %v870_v59 = vmax.f32 %v839_v38, %v854_v49  ;;  %v1184_v63 = vlaneseq }
 0x1da   : > { %1323 = vmatmul.mubr.msk.f32.vlgmr.msra.gmra.mxu0 %vm218_vm0, %v192_v41  ;;  %1324 = vmatmul.mubr.msk.f32.vlgmr.msra.gmra.mxu1 %vm218_vm0, %v192_v41  ;;  %v860_v50 = vmul.f32 0.01, %v768_v44  ;;  %v862_v51 = vmul.f32 0.01, %v845_v45  ;;  %v875_v56 = vmax.f32 %v766_v34, %v859_v47  ;;  %v877_v57 = vmax.f32 %v843_v35, %v861_v48 }
 0x1db   : > { %1093 = vmatprep.mubr.f32.mxu0 %v1484_v0  ;;  %1164 = vmatprep.mubr.f32.mxu1 %v1484_v0  ;;  %v1486_v0 = vmov 1983009808   ;;  %v1185_v2 = vshrl.u32 %v1184_v63, 7 }
 0x1dc   : > { %v876_v54 = vmax.f32 %v768_v44, %v860_v50  ;;  %v878_v55 = vmax.f32 %v845_v45, %v862_v51  ;;  %v1182_v62 = vunpack.c.l.s4 %v1486_v0 }
 0x1de   : > { %1057 = vmatprep.subr.mxu0 %v876_v54  ;;  %1128 = vmatprep.subr.mxu1 %v878_v55  ;;  %v1183_v1 = vunpack.c.0.s8 %v1182_v62 }
 0x1df   : > { %1058 = vmatpush1.msra.mxu0 %v875_v56  ;;  %1129 = vmatpush1.msra.mxu1 %v877_v57 }
 0x1e0   : > { %1059 = vmatprep.subr.mxu0 %v868_v58  ;;  %1130 = vmatprep.subr.mxu1 %v870_v59  ;;  %v1186_v7 = vsub.s32 %v1183_v1, %v1185_v2 }
 0x1e1   : > { %1060 = vmatpush1.msra.mxu0 %v867_v60  ;;  %1131 = vmatpush1.msra.mxu1 %v869_v61 }
 0x1e2   : > { %1325 = vmatmul.mubr.msk.f32.vlgmr.msra.gmra.mxu0 %vm218_vm0, %v192_v41  ;;  %1326 = vmatmul.mubr.msk.f32.vlgmr.msra.gmra.mxu1 %vm218_vm0, %v192_v41 }
 0x29a   : > { %v953_v3 = vpop.f32.mrf.mxu0  ;;  %v1024_v4 = vpop.f32.mrf.mxu1 }
 0x29b   : > { %v954_v9 = vadd.f32 %v953_v3, %v882_v5  ;;  %v1025_v10 = vadd.f32 %v1024_v4, %v882_v5 }
 0x29c   : > { %v955_v6 = vpop.f32.mrf.mxu0  ;;  %v1026_v8 = vpop.f32.mrf.mxu1 }
 0x29d   : > { %v956_v11 = vadd.f32 %v955_v6, %v882_v5  ;;  %v1027_v12 = vadd.f32 %v1026_v8, %v882_v5 }
 0x29f   : > { %v1179_v13 = vcombine.low %v954_v9, %v956_v11  ;;  %v1180_v14 = vcombine.low %v1025_v10, %v1027_v12 }
 0x2a1   : > { %v1187_v15 = vrot.slane %v1179_v13, %v1186_v7  ;;  %v1194_v16 = vrot.slane %v1180_v14, %v1186_v7 }
 0x2a2   : > { %v1095_v18 = vpop.f32.mrf.mxu0  ;;  %v1166_v19 = vpop.f32.mrf.mxu1 }
 0x2a3   : > { %v1195_v17 = vcombine.low %v1187_v15, %v1194_v16  ;;  %v1096_v22 = vadd.f32 %v1095_v18, %v882_v5  ;;  %v1167_v23 = vadd.f32 %v1166_v19, %v882_v5 }
 0x2a4   : > { %v1097_v20 = vpop.f32.mrf.mxu0  ;;  %v1168_v21 = vpop.f32.mrf.mxu1 }
 0x2a5   : > { %1215 = vst [vmem:[%s188_s23] sm:$0xff] %v1195_v17  ;;  %v1098_v24 = vadd.f32 %v1097_v20, %v882_v5  ;;  %v1169_v25 = vadd.f32 %v1168_v21, %v882_v5 }
 0x2a7   : > { %v1196_v26 = vcombine.low %v1096_v22, %v1098_v24  ;;  %v1197_v27 = vcombine.low %v1167_v23, %v1169_v25 }
 0x2a9   : > { %v1204_v28 = vrot.slane %v1196_v26, %v1186_v7  ;;  %v1211_v29 = vrot.slane %v1197_v27, %v1186_v7 }
 0x2ab   : > { %v1212_v30 = vcombine.low %v1204_v28, %v1211_v29 }
 0x2ad   : > { %1216 = vst [vmem:[%s188_s23 + $0x8] sm:$0xff] %v1212_v30 }
 0x2ae   : > { %1428 = shalt.err (!%p1425_p10)
}
 0x2af   : > { %s1429_s27 = scalar_lea.hbm %s1230_s17, 256  ;;  %s1433_s29 = scalar_lea.hbm %s1726_s3, 512 }
 0x2b0   : > { %p1430_p0 = scmp.ne.s32.totalorder %s1230_s17, %s1429_s27  ;;  %p1434_p1 = scmp.lt.s32.totalorder %s1230_s17, %s1726_s3 }
 0x2b1   : > { %p1435_p3 = scmp.lt.s32.totalorder %s1433_s29, %s1429_s27 }
 0x2b2   : > { %p1431_p2 = pnand %p1430_p0, %p1735_p12 }
 0x2b3   : > { %p1436_p6 = por %p1435_p3, %p1434_p1 }
 0x2b4   : > { %p1432_p9 = pneg %p1431_p2 }
 0x2b6   : > { %p1437_p11 = pnand %p1436_p6, %p1432_p9 }
 0x2b8   : > { %1440 = shalt.err (!%p1437_p11)
}
 0x2b9   : > { %1336 = dma.vmem_to_hbm [thread:$0]  (%p1735_p12), %s1233_s6, 256, %s1230_s17, %s1218_s19  }
 0x2ba PF: > { %s1244_s10 = sand.u32 1, %s1467_s12   ;;  %p1736_p13 = scmp.ne.s32.totalorder %s1732_s25, 0 }
 0x2bb   : > { %p1737_p4 = scmp.ge.s32.totalorder %s1479_s15, 2  ;;  %s1245_s11 = scalar_lea.sflag [#allocation4], %s1244_s10 }
 0x2bd   : > { %p1343_p5 = pnand %p1737_p4, %p1736_p13 }
 0x2bf   : > { %p1344_p7 = pneg %p1343_p5 }
 0x2c1   : > { %1462 = dma.done.wait (%p1344_p7), %s1245_s11, 256  }
 0x2c2   : > { %1464 = vsyncadd (%p1344_p7), %s1245_s11, 4294967040  ;;  %p16_p8 = scmp.ge.s32.totalorder %s1533_s18, 4   ;;  %s1738_s12 = smov %s1471_s13 }
 0x2c3   : > { %s1739_s13 = smov %s1475_s14  ;;  %s1740_s14 = smov %s1545_s21 }
 0x2c4   : > { %s1741_s15 = smov %s1533_s18  ;;  %18 = sbr.rel (!%p16_p8) target bundleno = 5 (0x5), region = 77 }
 0x2c9   :  { %1250 = vsyncpa [#allocation3], 1 }
 0x2ca   :  { %1252 = vsyncpa [#allocation3 + $0x1], 1 }
 0x2cb   :  { %1253 = vsyncpa [#allocation4], 1 }
 0x2cc   :  { %1255 = vsyncpa [#allocation4 + $0x1], 1 }

</bundles_post_ra>
